<compile_context>
chip_gen: v7x
topology: tpu7x:2x2x1
jax: 0.10.0
libtpu: 0.0.40
codegen_flags: <defaults>
</compile_context>

<pallas_src>
import jax
import jax.numpy as jnp
from jax.experimental import pallas as pl
from jax.experimental.pallas import tpu as pltpu


# ---------------------------------------------------------------------------
# helpers
# ---------------------------------------------------------------------------
def _round_up(n, m):
    return ((n + m - 1) // m) * m


# ---------------------------------------------------------------------------
# kernel
# ---------------------------------------------------------------------------
def autoencoder_kernel(x_ref,
                       w1_ref, b1_ref,
                       w2_ref, b2_ref,
                       w3_ref, b3_ref,
                       w4_ref, b4_ref,
                       recon_ref, z_ref):
    # x tile: (TB, input_dim) f32
    x = x_ref[...]

    # ---- encoder ----
    h1 = jnp.dot(x.astype(jnp.bfloat16), w1_ref[...],
                 preferred_element_type=jnp.float32) + b1_ref[...]
    h1 = jnp.maximum(h1, 0.0)                                   # ReLU (f32)

    z = jnp.dot(h1.astype(jnp.bfloat16), w2_ref[...],
                preferred_element_type=jnp.float32) + b2_ref[...]

    # ---- decoder ----
    h2 = jnp.dot(z.astype(jnp.bfloat16), w3_ref[...],
                 preferred_element_type=jnp.float32) + b3_ref[...]
    h2 = jnp.maximum(h2, 0.0)                                   # ReLU (f32)

    recon = jnp.dot(h2.astype(jnp.bfloat16), w4_ref[...],
                    preferred_element_type=jnp.float32) + b4_ref[...]

    recon_ref[...] = recon.astype(recon_ref.dtype)
    z_ref[...] = z.astype(z_ref.dtype)      # lane-dense (TB, latent_pad) store


# ---------------------------------------------------------------------------
# parameter prep (done ONCE, outside the per-step pipeline)
# ---------------------------------------------------------------------------
def prepare_params(p):
    """Zero-pad hidden/latent dims to multiples of 128 and cast weights to bf16.

    Padding is exact: padded weight rows/cols and padded bias entries are zero,
    so padded activation columns are identically zero and do not perturb the
    un-padded outputs.
    """
    input_dim, hidden = p["w1"].shape
    latent = p["w2"].shape[1]
    hid_p = _round_up(hidden, 128)
    lat_p = _round_up(latent, 128)

    def pad2(a, rows, cols):
        return jnp.pad(a, ((0, rows - a.shape[0]), (0, cols - a.shape[1])))

    return dict(
        w1=pad2(p["w1"], input_dim, hid_p).astype(jnp.bfloat16),
        b1=pad2(p["b1"], 1, hid_p),                       # f32 bias
        w2=pad2(p["w2"], hid_p, lat_p).astype(jnp.bfloat16),
        b2=pad2(p["b2"], 1, lat_p),
        w3=pad2(p["w3"], lat_p, hid_p).astype(jnp.bfloat16),
        b3=pad2(p["b3"], 1, hid_p),
        w4=pad2(p["w4"], hid_p, input_dim).astype(jnp.bfloat16),
        b4=pad2(p["b4"], 1, input_dim),
        input_dim=input_dim, hidden_p=hid_p, latent_p=lat_p, latent=latent,
    )


# ---------------------------------------------------------------------------
# forward wrapper
# ---------------------------------------------------------------------------
def autoencoder_forward(x, pp, *, tb=256):
    """x: (B, input_dim) f32. pp: output of prepare_params. Returns (recon, z)."""
    B, input_dim = x.shape
    assert input_dim == pp["input_dim"]
    hid_p, lat_p, latent = pp["hidden_p"], pp["latent_p"], pp["latent"]

    # batch tile: multiple of 8 (f32 sublane), capped by (padded) batch size
    TB = min(tb, _round_up(B, 8))
    B_pad = _round_up(B, TB)
    x_p = x if B_pad == B else jnp.pad(x, ((0, B_pad - B), (0, 0)))
    grid = (B_pad // TB,)

    # advisory cost estimate for XLA's scheduler
    flops = 2 * B_pad * (input_dim * hid_p + hid_p * lat_p
                         + lat_p * hid_p + hid_p * input_dim)
    w_bytes = sum(int(pp[k].size) * pp[k].dtype.itemsize
                  for k in ("w1", "b1", "w2", "b2", "w3", "b3", "w4", "b4"))
    bytes_accessed = (x_p.size * 4                 # x in
                      + w_bytes                    # weights/biases
                      + B_pad * input_dim * 4      # recon out
                      + B_pad * lat_p * 4)         # z out
    cost = pl.CostEstimate(flops=flops, transcendentals=0,
                           bytes_accessed=bytes_accessed)

    act_spec = lambda feat: pl.BlockSpec((TB, feat), lambda i: (i, 0))
    res_spec = lambda a: pl.BlockSpec(a.shape, lambda i: (0, 0))  # VMEM-resident

    recon, z_pad = pl.pallas_call(
        autoencoder_kernel,
        out_shape=(
            jax.ShapeDtypeStruct((B_pad, input_dim), jnp.float32),   # reconstructed
            jax.ShapeDtypeStruct((B_pad, lat_p), jnp.float32),       # z (padded)
        ),
        grid_spec=pltpu.PrefetchScalarGridSpec(
            num_scalar_prefetch=0,
            grid=grid,
            in_specs=[
                act_spec(input_dim),
                res_spec(pp["w1"]), res_spec(pp["b1"]),
                res_spec(pp["w2"]), res_spec(pp["b2"]),
                res_spec(pp["w3"]), res_spec(pp["b3"]),
                res_spec(pp["w4"]), res_spec(pp["b4"]),
            ],
            out_specs=(act_spec(input_dim), act_spec(lat_p)),
        ),
        compiler_params=pltpu.CompilerParams(
            dimension_semantics=("parallel",)),
        cost_estimate=cost,
    )(x_p,
      pp["w1"], pp["b1"], pp["w2"], pp["b2"],
      pp["w3"], pp["b3"], pp["w4"], pp["b4"])

    # strip batch padding and the zero latent-padding columns
    return recon[:B], z_pad[:B, :latent]


# ---------------------------------------------------------------------------
# init + pure-JAX reference
# ---------------------------------------------------------------------------
def init_params(key, input_dim, latent_dim):
    hidden_dim = input_dim // 2
    ks = jax.random.split(key, 8)

    def linear(kw, kb, fan_in, fan_out):
        bound = 1.0 / jnp.sqrt(fan_in)
        w = jax.random.uniform(kw, (fan_in, fan_out), jnp.float32, -bound, bound)
        b = jax.random.uniform(kb, (1, fan_out), jnp.float32, -bound, bound)
        return w, b

    w1, b1 = linear(ks[0], ks[1], input_dim, hidden_dim)
    w2, b2 = linear(ks[2], ks[3], hidden_dim, latent_dim)
    w3, b3 = linear(ks[4], ks[5], latent_dim, hidden_dim)
    w4, b4 = linear(ks[6], ks[7], hidden_dim, input_dim)
    return dict(w1=w1, b1=b1, w2=w2, b2=b2, w3=w3, b3=b3, w4=w4, b4=b4)


def reference_forward(x, p):
    h1 = jnp.maximum(x @ p["w1"] + p["b1"], 0.0)
    z = h1 @ p["w2"] + p["b2"]
    h2 = jnp.maximum(z @ p["w3"] + p["b3"], 0.0)
    recon = h2 @ p["w4"] + p["b4"]
    return recon, z


# ---------------------------------------------------------------------------
if __name__ == "__main__":
    key = jax.random.PRNGKey(0)
    k_x, k_p = jax.random.split(key)

    batch = 200          # not a multiple of TB -> exercises batch padding
    input_dim = 64
    latent_dim = 16

    x = jax.random.normal(k_x, (batch, input_dim), jnp.float32)
    params = init_params(k_p, input_dim, latent_dim)
    prepped = prepare_params(params)

    # tb=128 -> B padded to 256, grid=(2,): exercises the pipelined batch grid
    recon, z = autoencoder_forward(x, prepped, tb=128)
    jax.block_until_ready((recon, z))

    # sanity check vs pure-f32 JAX reference (tolerance loosened for bf16 MXU)
    recon_ref, z_ref = reference_forward(x, params)
    assert recon.shape == (batch, input_dim)
    assert z.shape == (batch, latent_dim)

    def rel_err(a, b):
        return float(jnp.max(jnp.abs(a - b)) / (jnp.max(jnp.abs(b)) + 1e-6))

    assert rel_err(recon, recon_ref) < 2e-2, rel_err(recon, recon_ref)
    assert rel_err(z, z_ref) < 2e-2, rel_err(z, z_ref)

    print("KERNEL_OK")
</pallas_src>

<mosaic_0001>
module attributes {stable_mosaic.version = 11 : i64} {
  func.func @autoencoder_kernel(%arg0: i32, %arg1: memref<128x64xf32, #tpu.memory_space<vmem>>, %arg2: memref<64x128xbf16, #tpu.memory_space<vmem>>, %arg3: memref<1x128xf32, #tpu.memory_space<vmem>>, %arg4: memref<128x128xbf16, #tpu.memory_space<vmem>>, %arg5: memref<1x128xf32, #tpu.memory_space<vmem>>, %arg6: memref<128x128xbf16, #tpu.memory_space<vmem>>, %arg7: memref<1x128xf32, #tpu.memory_space<vmem>>, %arg8: memref<128x64xbf16, #tpu.memory_space<vmem>>, %arg9: memref<1x64xf32, #tpu.memory_space<vmem>>, %arg10: memref<128x64xf32, #tpu.memory_space<vmem>>, %arg11: memref<128x128xf32, #tpu.memory_space<vmem>>) attributes {dimension_semantics = [#tpu.dimension_semantics<parallel>], iteration_bounds = array<i64: 2>, scalar_prefetch = 0 : i64, scratch_operands = 0 : i64, tpu.core_type = #tpu.core_type<tc>, window_params = [{transform_indices = @transform_0, window_bounds = array<i64: 128, 64>}, {pipeline_mode = #tpu.pipeline_mode<synchronous>, transform_indices = @transform_1, window_bounds = array<i64: 64, 128>}, {pipeline_mode = #tpu.pipeline_mode<synchronous>, transform_indices = @transform_2, window_bounds = array<i64: 1, 128>}, {pipeline_mode = #tpu.pipeline_mode<synchronous>, transform_indices = @transform_3, window_bounds = array<i64: 128, 128>}, {pipeline_mode = #tpu.pipeline_mode<synchronous>, transform_indices = @transform_4, window_bounds = array<i64: 1, 128>}, {pipeline_mode = #tpu.pipeline_mode<synchronous>, transform_indices = @transform_5, window_bounds = array<i64: 128, 128>}, {pipeline_mode = #tpu.pipeline_mode<synchronous>, transform_indices = @transform_6, window_bounds = array<i64: 1, 128>}, {pipeline_mode = #tpu.pipeline_mode<synchronous>, transform_indices = @transform_7, window_bounds = array<i64: 128, 64>}, {pipeline_mode = #tpu.pipeline_mode<synchronous>, transform_indices = @transform_8, window_bounds = array<i64: 1, 64>}, {transform_indices = @transform_9, window_bounds = array<i64: 128, 64>}, {transform_indices = @transform_10, window_bounds = array<i64: 128, 128>}]} {
    %c0 = arith.constant 0 : index
    %c0_0 = arith.constant 0 : index
    %0 = vector.load %arg1[%c0, %c0_0] : memref<128x64xf32, #tpu.memory_space<vmem>>, vector<128x64xf32>
    %1 = arith.truncf %0 : vector<128x64xf32> to vector<128x64xbf16>
    %c0_1 = arith.constant 0 : index
    %c0_2 = arith.constant 0 : index
    %2 = vector.load %arg2[%c0_1, %c0_2] : memref<64x128xbf16, #tpu.memory_space<vmem>>, vector<64x128xbf16>
    %cst = arith.constant dense<0.000000e+00> : vector<128x128xf32>
    %3 = tpu.matmul %1, %2, %cst {dimension_numbers = #tpu.dot_dimension_numbers<[1], [0], [0], [1], [0, 0, 1, 1], [], []>} : vector<128x64xbf16>, vector<64x128xbf16>, vector<128x128xf32> -> vector<128x128xf32>
    %c0_3 = arith.constant 0 : index
    %c0_4 = arith.constant 0 : index
    %4 = vector.load %arg3[%c0_3, %c0_4] : memref<1x128xf32, #tpu.memory_space<vmem>>, vector<1x128xf32>
    %5 = vector.broadcast %4 : vector<1x128xf32> to vector<128x128xf32>
    %6 = arith.addf %3, %5 : vector<128x128xf32>
    %cst_5 = arith.constant 0.000000e+00 : f32
    %7 = vector.broadcast %cst_5 : f32 to vector<128x128xf32>
    %8 = arith.maximumf %6, %7 : vector<128x128xf32>
    %9 = arith.truncf %8 : vector<128x128xf32> to vector<128x128xbf16>
    %c0_6 = arith.constant 0 : index
    %c0_7 = arith.constant 0 : index
    %10 = vector.load %arg4[%c0_6, %c0_7] : memref<128x128xbf16, #tpu.memory_space<vmem>>, vector<128x128xbf16>
    %cst_8 = arith.constant dense<0.000000e+00> : vector<128x128xf32>
    %11 = tpu.matmul %9, %10, %cst_8 {dimension_numbers = #tpu.dot_dimension_numbers<[1], [0], [0], [1], [0, 0, 1, 1], [], []>} : vector<128x128xbf16>, vector<128x128xbf16>, vector<128x128xf32> -> vector<128x128xf32>
    %c0_9 = arith.constant 0 : index
    %c0_10 = arith.constant 0 : index
    %12 = vector.load %arg5[%c0_9, %c0_10] : memref<1x128xf32, #tpu.memory_space<vmem>>, vector<1x128xf32>
    %13 = vector.broadcast %12 : vector<1x128xf32> to vector<128x128xf32>
    %14 = arith.addf %11, %13 : vector<128x128xf32>
    %15 = arith.truncf %14 : vector<128x128xf32> to vector<128x128xbf16>
    %c0_11 = arith.constant 0 : index
    %c0_12 = arith.constant 0 : index
    %16 = vector.load %arg6[%c0_11, %c0_12] : memref<128x128xbf16, #tpu.memory_space<vmem>>, vector<128x128xbf16>
    %cst_13 = arith.constant dense<0.000000e+00> : vector<128x128xf32>
    %17 = tpu.matmul %15, %16, %cst_13 {dimension_numbers = #tpu.dot_dimension_numbers<[1], [0], [0], [1], [0, 0, 1, 1], [], []>} : vector<128x128xbf16>, vector<128x128xbf16>, vector<128x128xf32> -> vector<128x128xf32>
    %c0_14 = arith.constant 0 : index
    %c0_15 = arith.constant 0 : index
    %18 = vector.load %arg7[%c0_14, %c0_15] : memref<1x128xf32, #tpu.memory_space<vmem>>, vector<1x128xf32>
    %19 = vector.broadcast %18 : vector<1x128xf32> to vector<128x128xf32>
    %20 = arith.addf %17, %19 : vector<128x128xf32>
    %cst_16 = arith.constant 0.000000e+00 : f32
    %21 = vector.broadcast %cst_16 : f32 to vector<128x128xf32>
    %22 = arith.maximumf %20, %21 : vector<128x128xf32>
    %23 = arith.truncf %22 : vector<128x128xf32> to vector<128x128xbf16>
    %c0_17 = arith.constant 0 : index
    %c0_18 = arith.constant 0 : index
    %24 = vector.load %arg8[%c0_17, %c0_18] : memref<128x64xbf16, #tpu.memory_space<vmem>>, vector<128x64xbf16>
    %cst_19 = arith.constant dense<0.000000e+00> : vector<128x64xf32>
    %25 = tpu.matmul %23, %24, %cst_19 {dimension_numbers = #tpu.dot_dimension_numbers<[1], [0], [0], [1], [0, 0, 1, 1], [], []>} : vector<128x128xbf16>, vector<128x64xbf16>, vector<128x64xf32> -> vector<128x64xf32>
    %c0_20 = arith.constant 0 : index
    %c0_21 = arith.constant 0 : index
    %26 = vector.load %arg9[%c0_20, %c0_21] : memref<1x64xf32, #tpu.memory_space<vmem>>, vector<1x64xf32>
    %27 = vector.broadcast %26 : vector<1x64xf32> to vector<128x64xf32>
    %28 = arith.addf %25, %27 : vector<128x64xf32>
    %c0_22 = arith.constant 0 : index
    %c0_23 = arith.constant 0 : index
    %29 = vector.load %arg10[%c0_22, %c0_23] : memref<128x64xf32, #tpu.memory_space<vmem>>, vector<128x64xf32>
    tpu.vector_store %arg10[%c0_22, %c0_23], %28 {strides = array<i32>} : memref<128x64xf32, #tpu.memory_space<vmem>>, vector<128x64xf32>,
    %c0_24 = arith.constant 0 : index
    %c0_25 = arith.constant 0 : index
    %30 = vector.load %arg11[%c0_24, %c0_25] : memref<128x128xf32, #tpu.memory_space<vmem>>, vector<128x128xf32>
    tpu.vector_store %arg11[%c0_24, %c0_25], %14 {strides = array<i32>} : memref<128x128xf32, #tpu.memory_space<vmem>>, vector<128x128xf32>,
    return
  }
  func.func @transform_0(%arg0: i32) -> (i32, i32) {
    %c0_i32 = arith.constant 0 : i32
    %c0_i32_0 = arith.constant 0 : i32
    return %arg0, %c0_i32 : i32, i32
  }
  func.func @transform_1(%arg0: i32) -> (i32, i32) {
    %c0_i32 = arith.constant 0 : i32
    %c0_i32_0 = arith.constant 0 : i32
    %c0_i32_1 = arith.constant 0 : i32
    return %c0_i32, %c0_i32_0 : i32, i32
  }
  func.func @transform_2(%arg0: i32) -> (i32, i32) {
    %c0_i32 = arith.constant 0 : i32
    %c0_i32_0 = arith.constant 0 : i32
    %c0_i32_1 = arith.constant 0 : i32
    return %c0_i32, %c0_i32_0 : i32, i32
  }
  func.func @transform_3(%arg0: i32) -> (i32, i32) {
    %c0_i32 = arith.constant 0 : i32
    %c0_i32_0 = arith.constant 0 : i32
    %c0_i32_1 = arith.constant 0 : i32
    return %c0_i32, %c0_i32_0 : i32, i32
  }
  func.func @transform_4(%arg0: i32) -> (i32, i32) {
    %c0_i32 = arith.constant 0 : i32
    %c0_i32_0 = arith.constant 0 : i32
    %c0_i32_1 = arith.constant 0 : i32
    return %c0_i32, %c0_i32_0 : i32, i32
  }
  func.func @transform_5(%arg0: i32) -> (i32, i32) {
    %c0_i32 = arith.constant 0 : i32
    %c0_i32_0 = arith.constant 0 : i32
    %c0_i32_1 = arith.constant 0 : i32
    return %c0_i32, %c0_i32_0 : i32, i32
  }
  func.func @transform_6(%arg0: i32) -> (i32, i32) {
    %c0_i32 = arith.constant 0 : i32
    %c0_i32_0 = arith.constant 0 : i32
    %c0_i32_1 = arith.constant 0 : i32
    return %c0_i32, %c0_i32_0 : i32, i32
  }
  func.func @transform_7(%arg0: i32) -> (i32, i32) {
    %c0_i32 = arith.constant 0 : i32
    %c0_i32_0 = arith.constant 0 : i32
    %c0_i32_1 = arith.constant 0 : i32
    return %c0_i32, %c0_i32_0 : i32, i32
  }
  func.func @transform_8(%arg0: i32) -> (i32, i32) {
    %c0_i32 = arith.constant 0 : i32
    %c0_i32_0 = arith.constant 0 : i32
    %c0_i32_1 = arith.constant 0 : i32
    return %c0_i32, %c0_i32_0 : i32, i32
  }
  func.func @transform_9(%arg0: i32) -> (i32, i32) {
    %c0_i32 = arith.constant 0 : i32
    %c0_i32_0 = arith.constant 0 : i32
    return %arg0, %c0_i32 : i32, i32
  }
  func.func @transform_10(%arg0: i32) -> (i32, i32) {
    %c0_i32 = arith.constant 0 : i32
    %c0_i32_0 = arith.constant 0 : i32
    return %arg0, %c0_i32 : i32, i32
  }
}

</mosaic_0001>

<bundles_post_ra>
// kernel: tpu_custom_call.1
= control target key start
LH: loop header
LB: loop body
LE: loop exit
PB: predicated region body
PF: predicated region fallthrough
CT: control target
= control target key end

     0   :  { %16 = vsyncpa [#allocation3], 0  ;;  %s2032_s0 = inlined_call_operand.vmem [shape: f32[256,64], index: 0, kind: input, shape index: {}]   ;;  %s2033_s1 = inlined_call_operand.vmem [shape: bf16[64,128], index: 1, kind: input, shape index: {}]   ;;  %s2034_s2 = inlined_call_operand.vmem [shape: f32[1,128], index: 2, kind: input, shape index: {}]   ;;  %s2035_s3 = inlined_call_operand.vmem [shape: bf16[128,128], index: 3, kind: input, shape index: {}]   ;;  %s2036_s4 = inlined_call_operand.vmem [shape: f32[1,128], index: 4, kind: input, shape index: {}]   ;;  %s2037_s5 = inlined_call_operand.vmem [shape: bf16[128,128], index: 5, kind: input, shape index: {}]   ;;  %s2038_s6 = inlined_call_operand.vmem [shape: f32[1,128], index: 6, kind: input, shape index: {}]   ;;  %s2039_s7 = inlined_call_operand.vmem [shape: bf16[128,64], index: 7, kind: input, shape index: {}]   ;;  %s2040_s8 = inlined_call_operand.vmem [shape: f32[1,64], index: 8, kind: input, shape index: {}]   ;;  %s2041_s9 = inlined_call_operand.vmem [shape: f32[256,64], index: 9, kind: output, shape index: {0}]   ;;  %s2042_s10 = inlined_call_operand.hbm [shape: f32[256,128], index: 10, kind: output, shape index: {1}]  }
   0x1   :  { %18 = vsyncpa [#allocation3 + $0x1], 0  ;;  %s1705_s13 = smov 0   ;;  %s1707_s14 = smov 0  }
   0x2   :  { %s1709_s15 = smov 0   ;;  %s1711_s16 = smov 0  }
   0x3 LB: > { %s1726_s17 = sadd.s32 4294967295, %s1645_s16   ;;  %s1263_s18 = sadd.s32 4294967294, %s1645_s16   ;;  %s1645_s16 = sphi %s1711_s16, %s2050_s16   ;;  %s1641_s15 = sphi %s1709_s15, %s2049_s15   ;;  %s1637_s14 = sphi %s1707_s14, %s2048_s14   ;;  %s1633_s13 = sphi %s1705_s13, %s2047_s13  }
   0x4   : > { %s1730_s19 = sadd.s32 1, %s1645_s16   ;;  %s251_s20 = sadd.s32 1, %s1641_s15 }
   0x5   : > { %s248_s21 = ssub.s32 %s1645_s16, %s1730_s19  ;;  %p261_p0 = scmp.ne.s32.totalorder %s1641_s15, %s1637_s14 }
   0x6   : > { %p249_p1 = scmp.eq.s32.totalorder %s248_s21, 0  ;;  %p262_p2 = scmp.eq.s32.totalorder %s1726_s17, 1 }
   0x7   : > { %p267_p3 = scmp.ne.s32.totalorder %s1637_s14, %s1633_s13  ;;  %p268_p4 = scmp.eq.s32.totalorder %s1263_s18, 1 }
   0x8   : > { %s1741_s22 = scalar_select %p249_p1, %s1641_s15, %s251_s20  }
   0x9   : > { %p1743_p5 = por %p262_p2, %p261_p0  ;;  %p1747_p6 = por %p268_p4, %p267_p3 }
   0xa   : > { %p1266_p7 = scmp.ge.s32.totalorder %s1645_s16, 1  ;;  %p319_p8 = scmp.lt.s32.totalorder %s1645_s16, 3 }
   0xc   : > { %p320_p9 = pnand %p1266_p7, %p319_p8 }
   0xd   : > { %v1555_v0 = vld [vmem:[%s2033_s1] sm:$0xff] (!%p320_p9)   ;;  %s1268_s27 = sshll.u32 (!%p320_p9), %s1726_s17, 4  ;;  %v1556_v1 = vld [vmem:[%s2033_s1 + $0x8] sm:$0xff] (!%p320_p9)   ;;  %v1557_v2 = vld [vmem:[%s2033_s1 + $0x10] sm:$0xff] (!%p320_p9)   ;;  %vm439_vm0 = vcmask (!%p320_p9), 523264   ;;  %s359_s30 = sand.u32 (!%p320_p9), 1, %s1637_s14  }
   0xe   : > { %323 = sbr.rel (%p320_p9) target bundleno = 936 (0x3a8), region = 56  ;;  %p363_p10 = scmp.lt.s32.totalorder (!%p320_p9), %s1268_s27, 31  ;;  %1378 = vmatprep.subr.bf16.mxu0 (!%p320_p9), %v1555_v0  ;;  %v1559_v3 = vld [vmem:[%s2035_s3] sm:$0xff] (!%p320_p9)   ;;  %v1560_v4 = vld [vmem:[%s2035_s3 + $0x8] sm:$0xff] (!%p320_p9)   ;;  %v1558_v7 = vld [vmem:[%s2033_s1 + $0x18] sm:$0xff] (!%p320_p9)  }
   0xf   : > { %1379 = vmatpush3.bf16.msra.mxu0 (!%p320_p9), %v1555_v0  ;;  %1402 = vmatprep.subr.bf16.mxu1 (!%p320_p9), %v1559_v3  ;;  %v1561_v9 = vld [vmem:[%s2035_s3 + $0x10] sm:$0xff] (!%p320_p9)   ;;  %v1562_v14 = vld [vmem:[%s2035_s3 + $0x18] sm:$0xff] (!%p320_p9)   ;;  %v1563_v17 = vld [vmem:[%s2035_s3 + $0x20] sm:$0xff] (!%p320_p9)   ;;  %s1267_s11 = sshll.u32 (!%p320_p9), %s359_s30, 7  ;;  %s1317_s18 = sshll.u32 (!%p320_p9), %s1726_s17, 11 }
  0x10   : > { %1380 = vmatprep.subr.bf16.mxu0 (!%p320_p9), %v1556_v1  ;;  %1403 = vmatpush3.bf16.msra.mxu1 (!%p320_p9), %v1559_v3  ;;  %v1564_v22 = vld [vmem:[%s2035_s3 + $0x28] sm:$0xff] (!%p320_p9)   ;;  %v1565_v34 = vld [vmem:[%s2035_s3 + $0x30] sm:$0xff] (!%p320_p9)   ;;  %v1566_v35 = vld [vmem:[%s2035_s3 + $0x38] sm:$0xff] (!%p320_p9)   ;;  %s1891_s21 = scalar_lea.vmem (!%p320_p9), [#allocation2], %s1267_s11  ;;  %s1949_s11 = scalar_lea.sflag (!%p320_p9), [#allocation3], %s359_s30 }
  0x11   : > { %1404 = vmatprep.subr.bf16.mxu1 (!%p320_p9), %v1560_v4  ;;  %v1567_v36 = vld [vmem:[%s2037_s5] sm:$0xff] (!%p320_p9)   ;;  %v1568_v37 = vld [vmem:[%s2037_s5 + $0x8] sm:$0xff] (!%p320_p9)   ;;  %v1569_v38 = vld [vmem:[%s2037_s5 + $0x10] sm:$0xff] (!%p320_p9)   ;;  %s1176_s25 = sshll.u32 (!%p320_p9), %s1891_s21, 4  ;;  %s1647_s17 = smov (!%p320_p9), [#allocation2]   ;;  %s1945_s25 = int_to_ptr.vmem [resolvable:$true] %s1176_s25 }
  0x12   : > { %v1570_v39 = vld [vmem:[%s2037_s5 + $0x18] sm:$0xff] (!%p320_p9)   ;;  %v1571_v40 = vld [vmem:[%s2037_s5 + $0x20] sm:$0xff] (!%p320_p9)   ;;  %v1572_v41 = vld [vmem:[%s2037_s5 + $0x28] sm:$0xff] (!%p320_p9)   ;;  %s1583_s12 = scalar_lea.vmem (!%p320_p9), %s1945_s25, 2048 }
  0x13   : > { %1381 = vmatpush3.bf16.msra.mxu0 (!%p320_p9), %v1556_v1  ;;  %v1272_v42 = vld [vmem:[%s2034_s2] ss:$0 sm:$0xff] (!%p320_p9)  ;;  %p1584_p11 = scmp.ne.s32.totalorder (!%p320_p9), %s1945_s25, %s1583_s12 }
  0x14   : > { %1382 = vmatprep.subr.bf16.mxu0 (!%p320_p9), %v1557_v2  ;;  %1405 = vmatpush3.bf16.msra.mxu1 (!%p320_p9), %v1560_v4 }
  0x15   : > { %s2052_s27 = smov (!%p363_p10, %s1268_s27), 31  ;;  %1406 = vmatprep.subr.bf16.mxu1 %v1561_v9  ;;  %p1585_p12 = pnand %p1584_p11, %p1743_p5 }
  0x16   : > { %s2043_s20 = sshll.u32 %s2052_s27, 3 }
  0x17   : > { %s1777_s29 = scalar_lea.vmem %s2032_s0, %s2043_s20  ;;  %1383 = vmatpush3.bf16.msra.mxu0 %v1557_v2  ;;  %p1586_p13 = pneg %p1585_p12 }
  0x18   : > { %v376_v5 = vld [vmem:[%s1777_s29] sm:$0xff]  ;;  %v377_v6 = vld [vmem:[%s1777_s29 + $0x8] sm:$0xff]  ;;  %v378_v10 = vld [vmem:[%s1777_s29 + $0x10] sm:$0xff]  ;;  %1384 = vmatprep.subr.bf16.mxu0 %v1558_v7  ;;  %1407 = vmatpush3.bf16.msra.mxu1 %v1561_v9 }
  0x19   : > { %v392_v8 = vpack.c.bf16 %v377_v6, %v376_v5  ;;  %v379_v11 = vld [vmem:[%s1777_s29 + $0x18] sm:$0xff]  ;;  %v380_v12 = vld [vmem:[%s1777_s29 + $0x20] sm:$0xff]  ;;  %v381_v13 = vld [vmem:[%s1777_s29 + $0x28] sm:$0xff]  ;;  %1408 = vmatprep.subr.bf16.mxu1 %v1562_v14 }
  0x1a   : > { %v393_v15 = vpack.c.bf16 %v379_v11, %v378_v10  ;;  %v394_v16 = vpack.c.bf16 %v381_v13, %v380_v12  ;;  %v382_v18 = vld [vmem:[%s1777_s29 + $0x30] sm:$0xff]  ;;  %v383_v19 = vld [vmem:[%s1777_s29 + $0x38] sm:$0xff]  ;;  %v384_v20 = vld [vmem:[%s1777_s29 + $0x40] sm:$0xff] }
  0x1b   : > { %1386 = vmatprep.mubr.msk.bf16.mxu0 %vm439_vm0, %v392_v8  ;;  %1385 = vmatpush3.bf16.msra.mxu0 %v1558_v7  ;;  %v385_v21 = vld [vmem:[%s1777_s29 + $0x48] sm:$0xff]  ;;  %v395_v23 = vpack.c.bf16 %v383_v19, %v382_v18  ;;  %v386_v25 = vld [vmem:[%s1777_s29 + $0x50] sm:$0xff]  ;;  %v387_v26 = vld [vmem:[%s1777_s29 + $0x58] sm:$0xff] }
  0x1c   : > { %1409 = vmatpush3.bf16.msra.mxu1 %v1562_v14  ;;  %v396_v24 = vpack.c.bf16 %v385_v21, %v384_v20  ;;  %v388_v27 = vld [vmem:[%s1777_s29 + $0x60] sm:$0xff]  ;;  %v389_v28 = vld [vmem:[%s1777_s29 + $0x68] sm:$0xff]  ;;  %v397_v29 = vpack.c.bf16 %v387_v26, %v386_v25  ;;  %v390_v31 = vld [vmem:[%s1777_s29 + $0x70] sm:$0xff]  ;;  %1434 = vmatprep.subr.bf16.mxu0 %v1567_v36 }
  0x1d   : > { %1410 = vmatprep.subr.bf16.mxu1 %v1563_v17  ;;  %v398_v30 = vpack.c.bf16 %v389_v28, %v388_v27  ;;  %v391_v32 = vld [vmem:[%s1777_s29 + $0x78] sm:$0xff]  ;;  %s1943_s29 = scalar_lea.hbm %s2042_s10, %s1317_s18 }
  0x1e   : > { %1387 = vmatmul.mubr.msk.bf16.vlgmr.msra.gmra.mrb[0].mxu0 %vm439_vm0, %v393_v15  ;;  %v399_v33 = vpack.c.bf16 %v391_v32, %v390_v31 }
  0x1f   : > { %1390 = vmatprep.mubr.msk.bf16.mxu0 %vm439_vm0, %v394_v16  ;;  %1435 = vmatpush3.bf16.msra.mxu0 %v1567_v36  ;;  %v1574_v36 = vld [vmem:[%s2037_s5 + $0x38] sm:$0xff]  }
  0x20   : > { %1411 = vmatpush3.bf16.msra.mxu1 %v1563_v17  ;;  %1436 = vmatprep.subr.bf16.mxu0 %v1568_v37 }
  0x21   : > { %1412 = vmatprep.subr.bf16.mxu1 %v1564_v22 }
  0x23   : > { %1437 = vmatpush3.bf16.msra.mxu0 %v1568_v37  ;;  %v1575_v37 = vld [vmem:[%s2039_s7] sm:$0xff]  }
  0x24   : > { %1413 = vmatpush3.bf16.msra.mxu1 %v1564_v22  ;;  %1438 = vmatprep.subr.bf16.mxu0 %v1569_v38 }
  0x25   : > { %1414 = vmatprep.subr.bf16.mxu1 %v1565_v34 }
  0x26   : > { %1391 = vmatmul.mubr.msk.bf16.gmra.mrb[4].mxu0 %vm439_vm0, %v395_v23 }
  0x27   : > { %1394 = vmatprep.mubr.msk.bf16.mxu0 %vm439_vm0, %v396_v24  ;;  %1439 = vmatpush3.bf16.msra.mxu0 %v1569_v38  ;;  %v1576_v38 = vld [vmem:[%s2039_s7 + $0x8] sm:$0xff]  }
  0x28   : > { %1415 = vmatpush3.bf16.msra.mxu1 %v1565_v34  ;;  %1440 = vmatprep.subr.bf16.mxu0 %v1570_v39 }
  0x29   : > { %1416 = vmatprep.subr.bf16.mxu1 %v1566_v35 }
  0x2b   : > { %1441 = vmatpush3.bf16.msra.mxu0 %v1570_v39  ;;  %v1577_v39 = vld [vmem:[%s2039_s7 + $0x10] sm:$0xff]  }
  0x2c   : > { %1417 = vmatpush3.bf16.msra.mxu1 %v1566_v35  ;;  %1442 = vmatprep.subr.bf16.mxu0 %v1571_v40  ;;  %v1573_v35 = vld [vmem:[%s2037_s5 + $0x30] sm:$0xff]  }
  0x2d   : > { %1498 = vmatprep.subr.bf16.mxu1 %v1575_v37 }
  0x2e   : > { %1395 = vmatmul.mubr.msk.bf16.gmra.mrb[8].mxu0 %vm439_vm0, %v397_v29 }
  0x2f   : > { %1398 = vmatprep.mubr.msk.bf16.mxu0 %vm439_vm0, %v398_v30  ;;  %1443 = vmatpush3.bf16.msra.mxu0 %v1571_v40  ;;  %v1863_v40 = vld [vmem:[%s2039_s7 + $0x18] sm:$0xff]  }
  0x30   : > { %1444 = vmatprep.subr.bf16.mxu0 %v1572_v41 }
  0x33   : > { %1445 = vmatpush3.bf16.msra.mxu0 %v1572_v41  ;;  %v1869_v41 = vld [vmem:[%s2039_s7 + $0x20] sm:$0xff]  }
  0x34   : > { %1446 = vmatprep.subr.bf16.mxu0 %v1573_v35 }
  0x36   : > { %1399 = vmatmul.mubr.msk.bf16.gmra.mrb[12].mxu0 %vm439_vm0, %v399_v33 }
  0x37   : > { %1447 = vmatpush3.bf16.msra.mxu0 %v1573_v35 }
  0x38   : > { %1448 = vmatprep.subr.bf16.mxu0 %v1574_v36 }
  0x3b   : > { %1449 = vmatpush3.bf16.msra.mxu0 %v1574_v36 }
  0x3c   : > { %1466 = vmatprep.subr.bf16.mxu0 %v1575_v37 }
  0xf1   : > { %v1388_v43 = vpop.f32.mrb[0].mxu0 }
  0xf2   : > { %v507_v44 = vadd.f32 %v1388_v43, %v1272_v42  ;;  %v498_v45 = vpop.f32.mrb[1].mxu0  ;;  %v1887_v43 = vld [vmem:[%s2036_s4] ss:$0 sm:$0xff] }
  0xf3   : > { %v499_v46 = vadd.f32 %v1272_v42, %v498_v45  ;;  %v1389_v47 = vpop.f32.mrb[2].mxu0 }
  0xf4   : > { %v510_v48 = vadd.f32 %v1389_v47, %v1272_v42  ;;  %v501_v49 = vpop.f32.mrb[3].mxu0  ;;  %v563_v51 = vmax.f32 %v507_v44, 0.0 }
  0xf5   : > { %v502_v50 = vadd.f32 %v1272_v42, %v501_v49  ;;  %v561_v53 = vmax.f32 %v499_v46, 0.0 }
  0xf6   : > { %v564_v52 = vmax.f32 %v510_v48, 0.0 }
  0xf7   : > { %v562_v54 = vmax.f32 %v502_v50, 0.0 }
  0xf8   : > { %v578_v55 = vpack.c.bf16 %v564_v52, %v563_v51 }
  0xf9   : > { %v1392_v56 = vpop.f32.mrb[4].mxu0  ;;  %v577_v57 = vpack.c.bf16 %v562_v54, %v561_v53 }
  0xfa   : > { %v523_v58 = vadd.f32 %v1392_v56, %v1272_v42  ;;  %v514_v59 = vpop.f32.mrb[5].mxu0 }
  0xfb   : > { %v515_v60 = vadd.f32 %v1272_v42, %v514_v59  ;;  %v1393_v61 = vpop.f32.mrb[6].mxu0  ;;  %1418 = vmatprep.mubr.bf16.mxu1 %v577_v57 }
  0xfc   : > { %v526_v62 = vadd.f32 %v1393_v61, %v1272_v42  ;;  %v517_v63 = vpop.f32.mrb[7].mxu0  ;;  %1419 = vmatmul.mubr.bf16.vlgmr.msra.gmra.mrb[0].mxu1 %v578_v55  ;;  %v567_v1 = vmax.f32 %v523_v58, 0.0 }
  0xfd   : > { %v518_v0 = vadd.f32 %v1272_v42, %v517_v63  ;;  %v565_v3 = vmax.f32 %v515_v60, 0.0  ;;  %1506 = vmatpush3.bf16.msra.mxu1 %v1575_v37 }
  0xfe   : > { %v568_v2 = vmax.f32 %v526_v62, 0.0  ;;  %1499 = vmatprep.subr.bf16.mxu1 %v1576_v38 }
  0xff   : > { %v566_v4 = vmax.f32 %v518_v0, 0.0 }
 0x100   : > { %v580_v5 = vpack.c.bf16 %v568_v2, %v567_v1 }
 0x101   : > { %v579_v6 = vpack.c.bf16 %v566_v4, %v565_v3  ;;  %v1396_v7 = vpop.f32.mrb[8].mxu0  ;;  %1507 = vmatpush3.bf16.msra.mxu1 %v1576_v38 }
 0x102   : > { %v539_v8 = vadd.f32 %v1396_v7, %v1272_v42  ;;  %v530_v9 = vpop.f32.mrb[9].mxu0  ;;  %1500 = vmatprep.subr.bf16.mxu1 %v1577_v39 }
 0x103   : > { %v531_v10 = vadd.f32 %v1272_v42, %v530_v9  ;;  %v1397_v11 = vpop.f32.mrb[10].mxu0  ;;  %1422 = vmatprep.mubr.bf16.mxu1 %v579_v6 }
 0x104   : > { %v542_v12 = vadd.f32 %v1397_v11, %v1272_v42  ;;  %v533_v13 = vpop.f32.mrb[11].mxu0  ;;  %1423 = vmatmul.mubr.bf16.gmra.mrb[4].mxu1 %v580_v5  ;;  %v571_v15 = vmax.f32 %v539_v8, 0.0 }
 0x105   : > { %v534_v14 = vadd.f32 %v1272_v42, %v533_v13  ;;  %v569_v17 = vmax.f32 %v531_v10, 0.0  ;;  %1508 = vmatpush3.bf16.msra.mxu1 %v1577_v39 }
 0x106   : > { %v572_v16 = vmax.f32 %v542_v12, 0.0  ;;  %1501 = vmatprep.subr.bf16.mxu1 %v1863_v40 }
 0x107   : > { %v570_v18 = vmax.f32 %v534_v14, 0.0 }
 0x108   : > { %v582_v19 = vpack.c.bf16 %v572_v16, %v571_v15 }
 0x109   : > { %v581_v20 = vpack.c.bf16 %v570_v18, %v569_v17  ;;  %v1400_v21 = vpop.f32.mrb[12].mxu0  ;;  %1509 = vmatpush3.bf16.msra.mxu1 %v1863_v40 }
 0x10a   : > { %v555_v22 = vadd.f32 %v1400_v21, %v1272_v42  ;;  %v546_v23 = vpop.f32.mrb[13].mxu0  ;;  %1502 = vmatprep.subr.bf16.mxu1 %v1869_v41  ;;  %v1582_v21 = vld [vmem:[%s2039_s7 + $0x38] sm:$0xff]  }
 0x10b   : > { %v547_v24 = vadd.f32 %v1272_v42, %v546_v23  ;;  %v1401_v25 = vpop.f32.mrb[14].mxu0  ;;  %1426 = vmatprep.mubr.bf16.mxu1 %v581_v20  ;;  %v1581_v20 = vld [vmem:[%s2039_s7 + $0x30] sm:$0xff]  }
 0x10c   : > { %v558_v26 = vadd.f32 %v1401_v25, %v1272_v42  ;;  %v549_v27 = vpop.f32.mrb[15].mxu0  ;;  %1427 = vmatmul.mubr.bf16.gmra.mrb[8].mxu1 %v582_v19  ;;  %v575_v29 = vmax.f32 %v555_v22, 0.0  ;;  %v1294_v22 = vld [vmem:[%s2038_s6] ss:$0 sm:$0xff] }
 0x10d   : > { %v550_v28 = vadd.f32 %v1272_v42, %v549_v27  ;;  %v573_v31 = vmax.f32 %v547_v24, 0.0  ;;  %v1876_v42 = vld [vmem:[%s2039_s7 + $0x28] sm:$0xff]   ;;  %1510 = vmatpush3.bf16.msra.mxu1 %v1869_v41 }
 0x10e   : > { %v576_v30 = vmax.f32 %v558_v26, 0.0  ;;  %1503 = vmatprep.subr.bf16.mxu1 %v1876_v42 }
 0x10f   : > { %v574_v32 = vmax.f32 %v550_v28, 0.0 }
 0x110   : > { %v584_v33 = vpack.c.bf16 %v576_v30, %v575_v29 }
 0x111   : > { %v583_v34 = vpack.c.bf16 %v574_v32, %v573_v31  ;;  %1511 = vmatpush3.bf16.msra.mxu1 %v1876_v42 }
 0x112   : > { %1504 = vmatprep.subr.bf16.mxu1 %v1581_v20 }
 0x113   : > { %1430 = vmatprep.mubr.bf16.mxu1 %v583_v34 }
 0x114   : > { %1431 = vmatmul.mubr.bf16.gmra.mrb[12].mxu1 %v584_v33 }
 0x115   : > { %1512 = vmatpush3.bf16.msra.mxu1 %v1581_v20 }
 0x116   : > { %1505 = vmatprep.subr.bf16.mxu1 %v1582_v21 }
 0x119   : > { %1513 = vmatpush3.bf16.msra.mxu1 %v1582_v21 }
 0x1cf   : > { %v1420_v44 = vpop.f32.mrb[0].mxu1 }
 0x1d0   : > { %v699_v45 = vadd.f32 %v1420_v44, %v1887_v43  ;;  %v690_v46 = vpop.f32.mrb[1].mxu1 }
 0x1d1   : > { %v691_v47 = vadd.f32 %v1887_v43, %v690_v46  ;;  %v1421_v48 = vpop.f32.mrb[2].mxu1 }
 0x1d2   : > { %1139 = vst [vmem:[%s1891_s21 + $0x10] sm:$0xff] %v699_v45  ;;  %v702_v49 = vadd.f32 %v1421_v48, %v1887_v43  ;;  %v693_v50 = vpop.f32.mrb[3].mxu1 }
 0x1d3   : > { %1137 = vst [vmem:[%s1891_s21] sm:$0xff] %v691_v47  ;;  %v694_v51 = vadd.f32 %v1887_v43, %v693_v50 }
 0x1d4   : > { %v754_v52 = vpack.c.bf16 %v702_v49, %v699_v45  ;;  %1140 = vst [vmem:[%s1891_s21 + $0x18] sm:$0xff] %v702_v49 }
 0x1d5   : > { %v753_v53 = vpack.c.bf16 %v694_v51, %v691_v47  ;;  %1138 = vst [vmem:[%s1891_s21 + $0x8] sm:$0xff] %v694_v51 }
 0x1d7   : > { %v1424_v54 = vpop.f32.mrb[4].mxu1  ;;  %1450 = vmatprep.mubr.bf16.mxu0 %v753_v53 }
 0x1d8   : > { %v715_v55 = vadd.f32 %v1424_v54, %v1887_v43  ;;  %v706_v56 = vpop.f32.mrb[5].mxu1  ;;  %1451 = vmatmul.mubr.bf16.vlgmr.msra.gmra.mrb[16].mxu0 %v754_v52 }
 0x1d9   : > { %v707_v57 = vadd.f32 %v1887_v43, %v706_v56  ;;  %v1425_v58 = vpop.f32.mrb[6].mxu1  ;;  %1467 = vmatpush3.bf16.msra.mxu0 %v1575_v37 }
 0x1da   : > { %1143 = vst [vmem:[%s1891_s21 + $0x30] sm:$0xff] %v715_v55  ;;  %v718_v59 = vadd.f32 %v1425_v58, %v1887_v43  ;;  %v709_v60 = vpop.f32.mrb[7].mxu1  ;;  %1468 = vmatprep.subr.bf16.mxu0 %v1576_v38 }
 0x1db   : > { %1141 = vst [vmem:[%s1891_s21 + $0x20] sm:$0xff] %v707_v57  ;;  %v710_v61 = vadd.f32 %v1887_v43, %v709_v60 }
 0x1dc   : > { %v756_v62 = vpack.c.bf16 %v718_v59, %v715_v55  ;;  %1144 = vst [vmem:[%s1891_s21 + $0x38] sm:$0xff] %v718_v59 }
 0x1dd   : > { %v755_v63 = vpack.c.bf16 %v710_v61, %v707_v57  ;;  %1142 = vst [vmem:[%s1891_s21 + $0x28] sm:$0xff] %v710_v61  ;;  %1469 = vmatpush3.bf16.msra.mxu0 %v1576_v38 }
 0x1de   : > { %1470 = vmatprep.subr.bf16.mxu0 %v1577_v39 }
 0x1df   : > { %v1428_v0 = vpop.f32.mrb[8].mxu1  ;;  %1454 = vmatprep.mubr.bf16.mxu0 %v755_v63 }
 0x1e0   : > { %v731_v1 = vadd.f32 %v1428_v0, %v1887_v43  ;;  %v722_v2 = vpop.f32.mrb[9].mxu1  ;;  %1455 = vmatmul.mubr.bf16.gmra.mrb[20].mxu0 %v756_v62 }
 0x1e1   : > { %v723_v3 = vadd.f32 %v1887_v43, %v722_v2  ;;  %v1429_v4 = vpop.f32.mrb[10].mxu1  ;;  %1471 = vmatpush3.bf16.msra.mxu0 %v1577_v39 }
 0x1e2   : > { %1147 = vst [vmem:[%s1891_s21 + $0x50] sm:$0xff] %v731_v1  ;;  %v734_v5 = vadd.f32 %v1429_v4, %v1887_v43  ;;  %v725_v6 = vpop.f32.mrb[11].mxu1  ;;  %1472 = vmatprep.subr.bf16.mxu0 %v1863_v40 }
 0x1e3   : > { %1145 = vst [vmem:[%s1891_s21 + $0x40] sm:$0xff] %v723_v3  ;;  %v726_v7 = vadd.f32 %v1887_v43, %v725_v6 }
 0x1e4   : > { %v758_v8 = vpack.c.bf16 %v734_v5, %v731_v1  ;;  %1148 = vst [vmem:[%s1891_s21 + $0x58] sm:$0xff] %v734_v5 }
 0x1e5   : > { %v757_v9 = vpack.c.bf16 %v726_v7, %v723_v3  ;;  %1146 = vst [vmem:[%s1891_s21 + $0x48] sm:$0xff] %v726_v7  ;;  %1473 = vmatpush3.bf16.msra.mxu0 %v1863_v40 }
 0x1e6   : > { %1474 = vmatprep.subr.bf16.mxu0 %v1869_v41 }
 0x1e7   : > { %v1432_v10 = vpop.f32.mrb[12].mxu1  ;;  %1458 = vmatprep.mubr.bf16.mxu0 %v757_v9 }
 0x1e8   : > { %v747_v11 = vadd.f32 %v1432_v10, %v1887_v43  ;;  %v738_v12 = vpop.f32.mrb[13].mxu1  ;;  %1459 = vmatmul.mubr.bf16.gmra.mrb[24].mxu0 %v758_v8 }
 0x1e9   : > { %v739_v13 = vadd.f32 %v1887_v43, %v738_v12  ;;  %v1433_v14 = vpop.f32.mrb[14].mxu1  ;;  %1475 = vmatpush3.bf16.msra.mxu0 %v1869_v41 }
 0x1ea   : > { %1151 = vst [vmem:[%s1891_s21 + $0x70] sm:$0xff] %v747_v11  ;;  %v750_v15 = vadd.f32 %v1433_v14, %v1887_v43  ;;  %v741_v16 = vpop.f32.mrb[15].mxu1  ;;  %1476 = vmatprep.subr.bf16.mxu0 %v1876_v42 }
 0x1eb   : > { %1149 = vst [vmem:[%s1891_s21 + $0x60] sm:$0xff] %v739_v13  ;;  %v742_v17 = vadd.f32 %v1887_v43, %v741_v16 }
 0x1ec   : > { %v760_v18 = vpack.c.bf16 %v750_v15, %v747_v11  ;;  %1152 = vst [vmem:[%s1891_s21 + $0x78] sm:$0xff] %v750_v15 }
 0x1ed   : > { %v759_v19 = vpack.c.bf16 %v742_v17, %v739_v13  ;;  %1150 = vst [vmem:[%s1891_s21 + $0x68] sm:$0xff] %v742_v17  ;;  %1477 = vmatpush3.bf16.msra.mxu0 %v1876_v42  ;;  %s1587_s21 = sshll.u32 %s1647_s17, 4  ;;  %s1588_s21 = int_to_ptr.vmem [resolvable:$false] %s1587_s21 }
 0x1ee   : > { %1478 = vmatprep.subr.bf16.mxu0 %v1581_v20  ;;  %s1589_s20 = scalar_lea.vmem %s1588_s21, 4096  ;;  %p1590_p0 = scmp.lt.s32.totalorder %s1945_s25, %s1588_s21 }
 0x1ef   : > { %1462 = vmatprep.mubr.bf16.mxu0 %v759_v19  ;;  %p1591_p1 = scmp.lt.s32.totalorder %s1589_s20, %s1583_s12 }
 0x1f0   : > { %1463 = vmatmul.mubr.bf16.gmra.mrb[28].mxu0 %v760_v18 }
 0x1f1   : > { %1479 = vmatpush3.bf16.msra.mxu0 %v1581_v20  ;;  %p1592_p2 = por %p1591_p1, %p1590_p0 }
 0x1f2   : > { %1480 = vmatprep.subr.bf16.mxu0 %v1582_v21 }
 0x1f3   : > { %p1593_p3 = pnand %p1592_p2, %p1586_p13 }
 0x1f5   : > { %1481 = vmatpush3.bf16.msra.mxu0 %v1582_v21 }
 0x2ab   : > { %v1452_v23 = vpop.f32.mrb[16].mxu0 }
 0x2ac   : > { %v875_v24 = vadd.f32 %v1452_v23, %v1294_v22  ;;  %v866_v25 = vpop.f32.mrb[17].mxu0 }
 0x2ad   : > { %v867_v26 = vadd.f32 %v1294_v22, %v866_v25  ;;  %v1453_v27 = vpop.f32.mrb[18].mxu0 }
 0x2ae   : > { %v878_v28 = vadd.f32 %v1453_v27, %v1294_v22  ;;  %v869_v29 = vpop.f32.mrb[19].mxu0  ;;  %v931_v31 = vmax.f32 %v875_v24, 0.0 }
 0x2af   : > { %v870_v30 = vadd.f32 %v1294_v22, %v869_v29  ;;  %v929_v33 = vmax.f32 %v867_v26, 0.0 }
 0x2b0   : > { %v932_v32 = vmax.f32 %v878_v28, 0.0 }
 0x2b1   : > { %v930_v34 = vmax.f32 %v870_v30, 0.0 }
 0x2b2   : > { %v946_v35 = vpack.c.bf16 %v932_v32, %v931_v31 }
 0x2b3   : > { %v945_v36 = vpack.c.bf16 %v930_v34, %v929_v33  ;;  %v1456_v37 = vpop.f32.mrb[20].mxu0 }
 0x2b4   : > { %v891_v38 = vadd.f32 %v1456_v37, %v1294_v22  ;;  %v882_v39 = vpop.f32.mrb[21].mxu0 }
 0x2b5   : > { %v883_v40 = vadd.f32 %v1294_v22, %v882_v39  ;;  %v1457_v41 = vpop.f32.mrb[22].mxu0  ;;  %1482 = vmatprep.mubr.bf16.mxu0 %v945_v36 }
 0x2b6   : > { %v894_v42 = vadd.f32 %v1457_v41, %v1294_v22  ;;  %v885_v43 = vpop.f32.mrb[23].mxu0  ;;  %1483 = vmatmul.mubr.bf16.vlgmr.msra.gmra.mrb[32].mxu0 %v946_v35  ;;  %v935_v45 = vmax.f32 %v891_v38, 0.0 }
 0x2b7   : > { %v886_v44 = vadd.f32 %v1294_v22, %v885_v43  ;;  %v933_v47 = vmax.f32 %v883_v40, 0.0 }
 0x2b8   : > { %v936_v46 = vmax.f32 %v894_v42, 0.0 }
 0x2b9   : > { %v934_v48 = vmax.f32 %v886_v44, 0.0 }
 0x2ba   : > { %v948_v49 = vpack.c.bf16 %v936_v46, %v935_v45 }
 0x2bb   : > { %v947_v50 = vpack.c.bf16 %v934_v48, %v933_v47  ;;  %v1460_v51 = vpop.f32.mrb[24].mxu0 }
 0x2bc   : > { %v907_v52 = vadd.f32 %v1460_v51, %v1294_v22  ;;  %v898_v53 = vpop.f32.mrb[25].mxu0 }
 0x2bd   : > { %v899_v54 = vadd.f32 %v1294_v22, %v898_v53  ;;  %v1461_v55 = vpop.f32.mrb[26].mxu0  ;;  %1486 = vmatprep.mubr.bf16.mxu1 %v947_v50 }
 0x2be   : > { %v910_v56 = vadd.f32 %v1461_v55, %v1294_v22  ;;  %v901_v57 = vpop.f32.mrb[27].mxu0  ;;  %1487 = vmatmul.mubr.bf16.vlgmr.msra.gmra.mrb[16].mxu1 %v948_v49  ;;  %v939_v59 = vmax.f32 %v907_v52, 0.0 }
 0x2bf   : > { %v902_v58 = vadd.f32 %v1294_v22, %v901_v57  ;;  %v937_v61 = vmax.f32 %v899_v54, 0.0 }
 0x2c0   : > { %v940_v60 = vmax.f32 %v910_v56, 0.0 }
 0x2c1   : > { %v938_v62 = vmax.f32 %v902_v58, 0.0 }
 0x2c2   : > { %v950_v63 = vpack.c.bf16 %v940_v60, %v939_v59 }
 0x2c3   : > { %v949_v0 = vpack.c.bf16 %v938_v62, %v937_v61  ;;  %v1464_v1 = vpop.f32.mrb[28].mxu0 }
 0x2c4   : > { %v923_v2 = vadd.f32 %v1464_v1, %v1294_v22  ;;  %v914_v3 = vpop.f32.mrb[29].mxu0 }
 0x2c5   : > { %v915_v4 = vadd.f32 %v1294_v22, %v914_v3  ;;  %v1465_v5 = vpop.f32.mrb[30].mxu0  ;;  %1490 = vmatprep.mubr.bf16.mxu1 %v949_v0 }
 0x2c6   : > { %v926_v6 = vadd.f32 %v1465_v5, %v1294_v22  ;;  %v917_v7 = vpop.f32.mrb[31].mxu0  ;;  %1491 = vmatmul.mubr.bf16.gmra.mrb[20].mxu1 %v950_v63  ;;  %v943_v9 = vmax.f32 %v923_v2, 0.0 }
 0x2c7   : > { %v918_v8 = vadd.f32 %v1294_v22, %v917_v7  ;;  %v941_v11 = vmax.f32 %v915_v4, 0.0 }
 0x2c8   : > { %v944_v10 = vmax.f32 %v926_v6, 0.0 }
 0x2c9   : > { %v942_v12 = vmax.f32 %v918_v8, 0.0 }
 0x2ca   : > { %v952_v13 = vpack.c.bf16 %v944_v10, %v943_v9 }
 0x2cb   : > { %v951_v14 = vpack.c.bf16 %v942_v12, %v941_v11 }
 0x2cd   : > { %1494 = vmatprep.mubr.bf16.mxu1 %v951_v14 }
 0x2ce   : > { %1495 = vmatmul.mubr.bf16.gmra.mrb[24].mxu1 %v952_v13 }
 0x2cf   : > { %1596 = shalt.err (!%p1593_p3)
}
 0x2d0   : > { %s1597_s30 = scalar_lea.hbm %s1943_s29, 2048  ;;  %s1601_s28 = scalar_lea.hbm %s2042_s10, 4096 }
 0x2d1   : > { %p1598_p4 = scmp.ne.s32.totalorder %s1943_s29, %s1597_s30  ;;  %p1602_p9 = scmp.lt.u32.totalorder %s1943_s29, %s2042_s10 }
 0x2d2   : > { %p1603_p10 = scmp.lt.u32.totalorder %s1601_s28, %s1597_s30  ;;  %p1605_p12 = scmp.lt.u32.totalorder %s1597_s30, %s1943_s29 }
 0x2d3   : > { %p1599_p7 = pnand %p1598_p4, %p1743_p5 }
 0x2d4   : > { %p1604_p11 = por %p1603_p10, %p1602_p9 }
 0x2d5   : > { %p1600_p8 = pneg %p1599_p7 }
 0x2d6   : > { %p1606_p13 = por %p1605_p12, %p1604_p11 }
 0x2d8   : > { %p1607_p0 = pnand %p1606_p13, %p1600_p8 }
 0x2da   : > { %1610 = shalt.err (!%p1607_p0)
}
 0x2db   : > { %s1648_s20 = smov 128   ;;  %s1649_s12 = smov 8   ;;  %v1303_v15 = vld [vmem:[%s2040_s8] ss:$0 sm:$0xff] }
 0x2dc   : > { %1514 = dma.vmem_to_hbm [thread:$0]  (%p1743_p5), %s1945_s25, 2048, %s1943_s29, %s1949_s11, %s1648_s20, %s1648_s20, %s1649_s12  }
 0x2dd   : > { %s2046_s17 = sshll.u32 %s2052_s27, 3 }
 0x2de   : > { %s1981_s30 = scalar_lea.vmem %s2041_s9, %s2046_s17 }
 0x389   : > { %v1484_v16 = vpop.f32.mrb[32].mxu0 }
 0x38a   : > { %v1067_v17 = vadd.f32 %v1484_v16, %v1303_v15  ;;  %v1058_v18 = vpop.f32.mrb[33].mxu0 }
 0x38b   : > { %v1059_v19 = vadd.f32 %v1303_v15, %v1058_v18  ;;  %v1485_v20 = vpop.f32.mrb[34].mxu0 }
 0x38c   : > { %1123 = vst.msk [vmem:[%s1981_s30 + $0x10] sm:$0xff] %vm439_vm0, %v1067_v17  ;;  %v1070_v21 = vadd.f32 %v1485_v20, %v1303_v15  ;;  %v1061_v22 = vpop.f32.mrb[35].mxu0 }
 0x38d   : > { %1121 = vst.msk [vmem:[%s1981_s30] sm:$0xff] %vm439_vm0, %v1059_v19  ;;  %v1062_v23 = vadd.f32 %v1303_v15, %v1061_v22 }
 0x38e   : > { %1124 = vst.msk [vmem:[%s1981_s30 + $0x18] sm:$0xff] %vm439_vm0, %v1070_v21 }
 0x38f   : > { %1122 = vst.msk [vmem:[%s1981_s30 + $0x8] sm:$0xff] %vm439_vm0, %v1062_v23 }
 0x391   : > { %v1488_v24 = vpop.f32.mrb[16].mxu1 }
 0x392   : > { %v1083_v25 = vadd.f32 %v1488_v24, %v1303_v15  ;;  %v1074_v26 = vpop.f32.mrb[17].mxu1 }
 0x393   : > { %v1075_v27 = vadd.f32 %v1303_v15, %v1074_v26  ;;  %v1489_v28 = vpop.f32.mrb[18].mxu1 }
 0x394   : > { %1127 = vst.msk [vmem:[%s1981_s30 + $0x30] sm:$0xff] %vm439_vm0, %v1083_v25  ;;  %v1086_v29 = vadd.f32 %v1489_v28, %v1303_v15  ;;  %v1077_v30 = vpop.f32.mrb[19].mxu1 }
 0x395   : > { %1125 = vst.msk [vmem:[%s1981_s30 + $0x20] sm:$0xff] %vm439_vm0, %v1075_v27  ;;  %v1078_v31 = vadd.f32 %v1303_v15, %v1077_v30 }
 0x396   : > { %1128 = vst.msk [vmem:[%s1981_s30 + $0x38] sm:$0xff] %vm439_vm0, %v1086_v29 }
 0x397   : > { %1126 = vst.msk [vmem:[%s1981_s30 + $0x28] sm:$0xff] %vm439_vm0, %v1078_v31 }
 0x399   : > { %v1492_v32 = vpop.f32.mrb[20].mxu1 }
 0x39a   : > { %v1099_v33 = vadd.f32 %v1492_v32, %v1303_v15  ;;  %v1090_v34 = vpop.f32.mrb[21].mxu1 }
 0x39b   : > { %v1091_v35 = vadd.f32 %v1303_v15, %v1090_v34  ;;  %v1493_v36 = vpop.f32.mrb[22].mxu1 }
 0x39c   : > { %1131 = vst.msk [vmem:[%s1981_s30 + $0x50] sm:$0xff] %vm439_vm0, %v1099_v33  ;;  %v1102_v37 = vadd.f32 %v1493_v36, %v1303_v15  ;;  %v1093_v38 = vpop.f32.mrb[23].mxu1 }
 0x39d   : > { %1129 = vst.msk [vmem:[%s1981_s30 + $0x40] sm:$0xff] %vm439_vm0, %v1091_v35  ;;  %v1094_v39 = vadd.f32 %v1303_v15, %v1093_v38 }
 0x39e   : > { %1132 = vst.msk [vmem:[%s1981_s30 + $0x58] sm:$0xff] %vm439_vm0, %v1102_v37 }
 0x39f   : > { %1130 = vst.msk [vmem:[%s1981_s30 + $0x48] sm:$0xff] %vm439_vm0, %v1094_v39 }
 0x3a1   : > { %v1496_v40 = vpop.f32.mrb[24].mxu1 }
 0x3a2   : > { %v1115_v41 = vadd.f32 %v1496_v40, %v1303_v15  ;;  %v1106_v42 = vpop.f32.mrb[25].mxu1 }
 0x3a3   : > { %v1107_v43 = vadd.f32 %v1303_v15, %v1106_v42  ;;  %v1497_v44 = vpop.f32.mrb[26].mxu1 }
 0x3a4   : > { %1135 = vst.msk [vmem:[%s1981_s30 + $0x70] sm:$0xff] %vm439_vm0, %v1115_v41  ;;  %v1118_v45 = vadd.f32 %v1497_v44, %v1303_v15  ;;  %v1109_v46 = vpop.f32.mrb[27].mxu1 }
 0x3a5   : > { %1133 = vst.msk [vmem:[%s1981_s30 + $0x60] sm:$0xff] %vm439_vm0, %v1107_v43  ;;  %v1110_v47 = vadd.f32 %v1303_v15, %v1109_v46 }
 0x3a6   : > { %1136 = vst.msk [vmem:[%s1981_s30 + $0x78] sm:$0xff] %vm439_vm0, %v1118_v45 }
 0x3a7   : > { %1134 = vst.msk [vmem:[%s1981_s30 + $0x68] sm:$0xff] %vm439_vm0, %v1110_v47 }
 0x3a8 PF: > { %p1520_p5 = scmp.ge.s32.totalorder %s1645_s16, 2  ;;  %s1199_s23 = sand.u32 1, %s1633_s13  }
 0x3a9   : > { %s1200_s27 = scalar_lea.sflag [#allocation3], %s1199_s23 }
 0x3aa   : > { %p1517_p1 = pnand %p1520_p5, %p1747_p6 }
 0x3ac   : > { %1628 = dma.done.wait (!%p1517_p1), %s1200_s27, 2048  }
 0x3ad   : > { %1630 = vsyncadd (!%p1517_p1), %s1200_s27, 4294965248  ;;  %p21_p2 = scmp.ge.s32.totalorder %s1730_s19, 4   ;;  %s2047_s13 = smov %s1637_s14 }
 0x3ae   : > { %s2048_s14 = smov %s1641_s15  ;;  %s2049_s15 = smov %s1741_s22 }
 0x3af   : > { %s2050_s16 = smov %s1730_s19  ;;  %23 = sbr.rel (!%p21_p2) target bundleno = 3 (0x3), region = 103 }
 0x3b6   :  { %1205 = vsyncpa [#allocation3], 1 }
 0x3b7   :  { %1207 = vsyncpa [#allocation3 + $0x1], 1 }

</bundles_post_ra>
